<compile_context>
chip_gen: v5e
topology: v5e:2x2
jax: 0.10.0
libtpu: 0.0.40
codegen_flags: <defaults>
</compile_context>

<pallas_src>
import functools

import jax
import jax.numpy as jnp
from jax.experimental import pallas as pl
from jax.experimental.pallas import tpu as pltpu

LANES = 128
SUBLANES = 8
MAX_ROW_TILE = 4096  # 4096 x 128 x 4B = 2 MiB per f32 input buffer


def _round_up(a, b):
    return ((a + b - 1) // b) * b


def _cdiv(a, b):
    return -(-a // b)


def _bce_partial_sum_kernel(x_ref, t_ref, o_ref, acc_ref, *,
                            row_tile, blocks_per_par,
                            num_full_blocks, tail_valid, total_grid_blocks):
    p = pl.program_id(0)
    k = pl.program_id(1)
    # Unclamped block index; small int32 (a block count, not an element
    # count), so no overflow even for >2^31-element tensors.
    b = p * blocks_per_par + k

    @pl.when(k == 0)
    def _():
        acc_ref[...] = jnp.zeros_like(acc_ref)

    def compute_loss():
        # Upcast on load (inputs may be bf16); all math in f32.
        x = x_ref[...].astype(jnp.float32)
        t = t_ref[...].astype(jnp.float32)
        # Numerically-stable BCE-with-logits (same formula PyTorch uses):
        #   loss = max(x, 0) - x * t + log1p(exp(-|x|))
        return jnp.maximum(x, 0.0) - x * t + jnp.log1p(jnp.exp(-jnp.abs(x)))

    def fold(loss):
        # Fold the (row_tile, 128) tile onto the vreg-shaped accumulator with
        # pure VPU adds; no cross-lane reduce on the loop-carried path.
        acc_ref[...] += jnp.sum(
            loss.reshape(row_tile // SUBLANES, SUBLANES, LANES), axis=0)

    if tail_valid == 0 and total_grid_blocks == num_full_blocks:
        # Every grid point maps to a fully-valid tile: mask-free hot path only.
        fold(compute_loss())
    else:
        if num_full_blocks > 0:
            # Hot path: fully-valid tiles -> no iota, no compare, no select.
            @pl.when(b < num_full_blocks)
            def _():
                fold(compute_loss())

        if tail_valid > 0:
            # Cold path: the single ragged tail tile.  Tile-local indices
            # (always < row_tile*128) keep the mask math safely in int32 and
            # discard garbage from the partially-copied edge block.
            @pl.when(b == num_full_blocks)
            def _():
                loss = compute_loss()
                ridx = jax.lax.broadcasted_iota(jnp.int32, (row_tile, LANES), 0)
                lidx = jax.lax.broadcasted_iota(jnp.int32, (row_tile, LANES), 1)
                fold(jnp.where(ridx * LANES + lidx < tail_valid, loss, 0.0))
        # Clamped redundant grid points (b >= number of real blocks) fall
        # through with no compute at all: one redundant DMA, zero VPU work.

    @pl.when(k == pl.num_programs(1) - 1)
    def _():
        o_ref[...] = acc_ref[...].reshape(1, SUBLANES, LANES)


def bce_with_logits_loss(inputs, targets):
    """Mean BCE-with-logits over all elements (torch.nn.BCEWithLogitsLoss)."""
    assert inputs.shape == targets.shape
    n = 1
    for d in inputs.shape:
        n *= int(d)
    if n == 0:
        # torch.nn.BCEWithLogitsLoss (mean) over an empty tensor is NaN.
        return jnp.float32(jnp.nan)

    x = inputs.reshape(-1)
    t = targets.reshape(-1)

    # Lane-dense 2-D view; metadata-only when numel % 128 == 0 (common case).
    # Ragged sizes pay one pad copy (rare fallback kept for robustness).
    rem = n % LANES
    if rem:
        pad = LANES - rem
        x = jnp.pad(x, (0, pad))
        t = jnp.pad(t, (0, pad))
        padded_n = n + pad
    else:
        padded_n = n
    rows = padded_n // LANES

    x2 = x.reshape(rows, LANES)
    t2 = t.reshape(rows, LANES)

    # Row-tile granularity follows dtype sublane packing: 8 (32-bit),
    # 16 (bf16/f16), 32 (int8/fp8) -> keeps sub-32-bit loads unmasked.
    itemsize = int(jnp.dtype(inputs.dtype).itemsize)
    packing = SUBLANES * max(1, 4 // itemsize)

    row_tile = min(MAX_ROW_TILE, _round_up(rows, packing))
    num_blocks = _cdiv(rows, row_tile)

    # Leading "parallel" axis: two contiguous halves of the blocks when there
    # is enough work (lets v7x's 2 TensorCores split the stream; harmless on
    # single-TC v5e/v6e since each p owns its own output block).
    num_par = 2 if num_blocks >= 2 else 1
    blocks_per_par = _cdiv(num_blocks, num_par)

    elems_per_block = row_tile * LANES
    num_full_blocks = n // elems_per_block               # fully-valid tiles
    tail_valid = n - num_full_blocks * elems_per_block   # 0 <= . < elems_per_block
    total_grid_blocks = num_par * blocks_per_par

    def in_map(p, k):
        # Clamp redundant trailing grid points to the last valid block; the
        # kernel skips all compute on them.
        return (jnp.minimum(p * blocks_per_par + k, num_blocks - 1), 0)

    in_spec = pl.BlockSpec((row_tile, LANES), in_map)
    out_spec = pl.BlockSpec((1, SUBLANES, LANES), lambda p, k: (p, 0, 0))

    kernel = functools.partial(
        _bce_partial_sum_kernel,
        row_tile=row_tile, blocks_per_par=blocks_per_par,
        num_full_blocks=num_full_blocks, tail_valid=tail_valid,
        total_grid_blocks=total_grid_blocks)

    partial_sums = pl.pallas_call(
        kernel,
        out_shape=jax.ShapeDtypeStruct((num_par, SUBLANES, LANES), jnp.float32),
        grid_spec=pltpu.PrefetchScalarGridSpec(
            num_scalar_prefetch=0,
            grid=(num_par, blocks_per_par),
            in_specs=[in_spec, in_spec],
            out_specs=out_spec,
            scratch_shapes=[pltpu.VMEM((SUBLANES, LANES), jnp.float32)],
        ),
        compiler_params=pltpu.CompilerParams(
            dimension_semantics=("parallel", "arbitrary")),
    )(x2, t2)

    # Final cross-lane reduction and mean in plain JAX (tiny).
    return (jnp.sum(partial_sums) / jnp.float32(n)).astype(jnp.float32)


if __name__ == "__main__":
    key = jax.random.PRNGKey(0)
    k1, k2 = jax.random.split(key)

    # Small NCHW-shaped logits / binary targets, as the module's forward implies.
    inputs = jax.random.normal(k1, (2, 4, 16, 16), dtype=jnp.float32)
    targets = (jax.random.uniform(k2, (2, 4, 16, 16)) > 0.5).astype(jnp.float32)

    loss = jax.block_until_ready(bce_with_logits_loss(inputs, targets))

    # Reference check in plain JAX (same stable formula as PyTorch).
    ref = jnp.mean(
        jnp.maximum(inputs, 0.0)
        - inputs * targets
        + jnp.log1p(jnp.exp(-jnp.abs(inputs)))
    )
    assert jnp.allclose(loss, ref, rtol=1e-5, atol=1e-6), (loss, ref)

    # Ragged size (numel % 128 != 0) exercises the masked tail cold path.
    k3, k4 = jax.random.split(k2)
    x_r = jax.random.normal(k3, (3, 5, 7, 11), dtype=jnp.float32)
    t_r = (jax.random.uniform(k4, (3, 5, 7, 11)) > 0.5).astype(jnp.float32)
    loss_r = jax.block_until_ready(bce_with_logits_loss(x_r, t_r))
    ref_r = jnp.mean(
        jnp.maximum(x_r, 0.0)
        - x_r * t_r
        + jnp.log1p(jnp.exp(-jnp.abs(x_r)))
    )
    assert jnp.allclose(loss_r, ref_r, rtol=1e-5, atol=1e-6), (loss_r, ref_r)

    print("KERNEL_OK")
</pallas_src>

<mosaic_0001>
module attributes {stable_mosaic.version = 11 : i64} {
  func.func @_bce_partial_sum_kernel(%arg0: i32, %arg1: i32, %arg2: memref<16x128xf32, #tpu.memory_space<vmem>>, %arg3: memref<16x128xf32, #tpu.memory_space<vmem>>, %arg4: memref<1x8x128xf32, #tpu.memory_space<vmem>>, %arg5: memref<8x128xf32, #tpu.memory_space<vmem>>) attributes {dimension_semantics = [#tpu.dimension_semantics<parallel>, #tpu.dimension_semantics<arbitrary>], iteration_bounds = array<i64: 1, 1>, scalar_prefetch = 0 : i64, scratch_operands = 1 : i64, tpu.core_type = #tpu.core_type<tc>, window_params = [{transform_indices = @transform_0, window_bounds = array<i64: 16, 128>}, {transform_indices = @transform_1, window_bounds = array<i64: 16, 128>}, {transform_indices = @transform_2, window_bounds = array<i64: 1, 8, 128>}]} {
    %c0_i32 = arith.constant 0 : i32
    %0 = arith.cmpi eq, %arg1, %c0_i32 : i32
    %1 = arith.extui %0 : i1 to i32
    %c0_i32_0 = arith.constant 0 : i32
    %2 = arith.cmpi ne, %1, %c0_i32_0 : i32
    scf.if %2 {
      %cst_12 = arith.constant 0.000000e+00 : f32
      %23 = vector.broadcast %cst_12 : f32 to vector<8x128xf32>
      %c0_13 = arith.constant 0 : index
      %c0_14 = arith.constant 0 : index
      %24 = vector.load %arg5[%c0_13, %c0_14] : memref<8x128xf32, #tpu.memory_space<vmem>>, vector<8x128xf32>
      tpu.vector_store %arg5[%c0_13, %c0_14], %23 {strides = array<i32>} : memref<8x128xf32, #tpu.memory_space<vmem>>, vector<8x128xf32>,
    } else {
    }
    %c0 = arith.constant 0 : index
    %c0_1 = arith.constant 0 : index
    %3 = vector.load %arg2[%c0, %c0_1] : memref<16x128xf32, #tpu.memory_space<vmem>>, vector<16x128xf32>
    %c0_2 = arith.constant 0 : index
    %c0_3 = arith.constant 0 : index
    %4 = vector.load %arg3[%c0_2, %c0_3] : memref<16x128xf32, #tpu.memory_space<vmem>>, vector<16x128xf32>
    %cst = arith.constant 0.000000e+00 : f32
    %5 = vector.broadcast %cst : f32 to vector<16x128xf32>
    %6 = arith.maximumf %3, %5 : vector<16x128xf32>
    %7 = arith.mulf %3, %4 : vector<16x128xf32>
    %8 = arith.subf %6, %7 : vector<16x128xf32>
    %9 = math.absf %3 : vector<16x128xf32>
    %cst_4 = arith.constant 0.000000e+00 : f32
    %10 = vector.broadcast %cst_4 : f32 to vector<16x128xf32>
    %11 = arith.subf %10, %9 : vector<16x128xf32>
    %12 = math.exp %11 : vector<16x128xf32>
    %13 = math.log1p %12 : vector<16x128xf32>
    %14 = arith.addf %8, %13 : vector<16x128xf32>
    %c0_5 = arith.constant 0 : index
    %c0_6 = arith.constant 0 : index
    %15 = vector.load %arg5[%c0_5, %c0_6] : memref<8x128xf32, #tpu.memory_space<vmem>>, vector<8x128xf32>
    %16 = vector.shape_cast %14 : vector<16x128xf32> to vector<2x8x128xf32>
    %cst_7 = arith.constant dense<0.000000e+00> : vector<8x128xf32>
    %17 = vector.multi_reduction <add>, %16, %cst_7 [0] : vector<2x8x128xf32> to vector<8x128xf32>
    %18 = arith.addf %15, %17 : vector<8x128xf32>
    %c0_8 = arith.constant 0 : index
    %c0_9 = arith.constant 0 : index
    %19 = vector.load %arg5[%c0_8, %c0_9] : memref<8x128xf32, #tpu.memory_space<vmem>>, vector<8x128xf32>
    tpu.vector_store %arg5[%c0_8, %c0_9], %18 {strides = array<i32>} : memref<8x128xf32, #tpu.memory_space<vmem>>, vector<8x128xf32>,
    %c0_i32_10 = arith.constant 0 : i32
    %20 = arith.cmpi eq, %arg1, %c0_i32_10 : i32
    %21 = arith.extui %20 : i1 to i32
    %c0_i32_11 = arith.constant 0 : i32
    %22 = arith.cmpi ne, %21, %c0_i32_11 : i32
    scf.if %22 {
      %c0_12 = arith.constant 0 : index
      %c0_13 = arith.constant 0 : index
      %23 = vector.load %arg5[%c0_12, %c0_13] : memref<8x128xf32, #tpu.memory_space<vmem>>, vector<8x128xf32>
      %24 = vector.shape_cast %23 : vector<8x128xf32> to vector<1x8x128xf32>
      %c0_14 = arith.constant 0 : index
      %c0_15 = arith.constant 0 : index
      %c0_16 = arith.constant 0 : index
      %25 = vector.load %arg4[%c0_14, %c0_15, %c0_16] : memref<1x8x128xf32, #tpu.memory_space<vmem>>, vector<1x8x128xf32>
      tpu.vector_store %arg4[%c0_14, %c0_15, %c0_16], %24 {strides = array<i32>} : memref<1x8x128xf32, #tpu.memory_space<vmem>>, vector<1x8x128xf32>,
    } else {
    }
    return
  }
  func.func @transform_0(%arg0: i32, %arg1: i32) -> (i32, i32) {
    %c1_i32 = arith.constant 1 : i32
    %0 = arith.muli %arg0, %c1_i32 : i32
    %1 = arith.addi %0, %arg1 : i32
    %c0_i32 = arith.constant 0 : i32
    %2 = arith.minsi %1, %c0_i32 : i32
    %c0_i32_0 = arith.constant 0 : i32
    %c0_i32_1 = arith.constant 0 : i32
    return %2, %c0_i32_0 : i32, i32
  }
  func.func @transform_1(%arg0: i32, %arg1: i32) -> (i32, i32) {
    %c1_i32 = arith.constant 1 : i32
    %0 = arith.muli %arg0, %c1_i32 : i32
    %1 = arith.addi %0, %arg1 : i32
    %c0_i32 = arith.constant 0 : i32
    %2 = arith.minsi %1, %c0_i32 : i32
    %c0_i32_0 = arith.constant 0 : i32
    %c0_i32_1 = arith.constant 0 : i32
    return %2, %c0_i32_0 : i32, i32
  }
  func.func @transform_2(%arg0: i32, %arg1: i32) -> (i32, i32, i32) {
    %c0_i32 = arith.constant 0 : i32
    %c0_i32_0 = arith.constant 0 : i32
    %c0_i32_1 = arith.constant 0 : i32
    return %arg0, %c0_i32, %c0_i32_0 : i32, i32, i32
  }
}

</mosaic_0001>

<bundles_post_ra>
// kernel: tpu_custom_call.1
= control target key start
LH: loop header
LB: loop body
LE: loop exit
PB: predicated region body
PF: predicated region fallthrough
CT: control target
= control target key end

     0   :  { %7 = vsyncpa [#allocation4], 0  ;;  %s258_s0 = inlined_call_operand.hbm [shape: f32[16,128], index: 0, kind: input, shape index: {}]   ;;  %s259_s1 = inlined_call_operand.hbm [shape: f32[16,128], index: 1, kind: input, shape index: {}]   ;;  %s260_s2 = inlined_call_operand.hbm [shape: f32[1,8,128], index: 2, kind: output, shape index: {}]  }
   0x1   :  { %8 = vsyncpa [#allocation7], 0 }
   0x2   :  { %9 = vsyncpa [#allocation5], 0  ;;  %s20_s11 = sshll.u32 %s258_s0, 4  ;;  %s229_s12 = smov [#allocation3]   ;;  %s21_s11 = int_to_ptr.hbm [resolvable:$true] %s20_s11 }
   0x3   :  { %s22_s13 = sshll.u32 %s229_s12, 4  ;;  %s39_s16 = sshll.u32 %s259_s1, 4  ;;  %s23_s13 = int_to_ptr.vmem [resolvable:$true] %s22_s13  ;;  %s40_s16 = int_to_ptr.hbm [resolvable:$true] %s39_s16 }
   0x4   :  { %s230_s17 = smov 128   ;;  %s231_s18 = smov 8  }
   0x5   :  { %28 = dma.hbm_to_vmem [thread:$0]  %s21_s11, 256, %s23_s13, [#allocation4], %s230_s17, %s230_s17, %s231_s18  }
   0x6   :  { %s232_s19 = smov [#allocation6]  }
   0x7   :  { %s41_s20 = sshll.u32 %s232_s19, 4  ;;  %s42_s20 = int_to_ptr.vmem [resolvable:$true] %s41_s20 }
   0x8   :  { %47 = dma.hbm_to_vmem [thread:$0]  %s40_s16, 256, %s42_s20, [#allocation7], %s230_s17, %s230_s17, %s231_s18  }
   0x9   :  { %223 = dma.done.wait [#allocation4], 256  }
   0xa   :  { %224 = vsyncadd [#allocation4], 4294967040 }
   0xb   :  { %225 = dma.done.wait [#allocation7], 256  }
   0xc   :  { %226 = vsyncadd [#allocation7], 4294967040  ;;  %v69_v0 = vld [vmem:[#allocation3] sm:$0xff]  ;;  %v70_v1 = vld [vmem:[#allocation3 + $0x8] sm:$0xff]  ;;  %s233_s0 = smov [#allocation8]   ;;  %s123_s23 = sshll.u32 %s260_s2, 4  ;;  %s124_s23 = int_to_ptr.hbm [resolvable:$true] %s123_s23 }
   0xd   :  { %v79_v2 = vand.u32 2147483647, %v69_v0  ;;  %v80_v3 = vand.u32 2147483647, %v70_v1  ;;  %v71_v12 = vld [vmem:[#allocation6] sm:$0xff]  ;;  %v72_v15 = vld [vmem:[#allocation6 + $0x8] sm:$0xff] }
   0xe   :  { %v73_v17 = vmax.f32 %v69_v0, 0.0  ;;  %v75_v18 = vmul.f32 %v71_v12, %v69_v0  ;;  %v74_v21 = vmax.f32 %v70_v1, 0.0  ;;  %v76_v22 = vmul.f32 %v72_v15, %v70_v1  ;;  %s121_s1 = sshll.u32 %s233_s0, 4  ;;  %s122_s1 = int_to_ptr.vmem [resolvable:$true] %s121_s1 }
   0xf   :  { %v81_v4 = vsub.f32 0.0, %v79_v2  ;;  %v82_v5 = vsub.f32 0.0, %v80_v3 }
  0x10   :  { %v77_v26 = vsub.f32 %v73_v17, %v75_v18  ;;  %v78_v29 = vsub.f32 %v74_v21, %v76_v22 }
  0x11   :  { %v83_v6 = vmul.f32 1.442695, %v81_v4  ;;  %v85_v7 = vmul.f32 1.442695, %v82_v5 }
  0x13   :  { %143 = vpow2.f32 %v83_v6 }
  0x14   :  { %145 = vpow2.f32 %v85_v7 }
  0x19   :  { %v144_v8 = vpop.eup %143 }
  0x1a   :  { %v146_v9 = vpop.eup %145  ;;  %v87_v10 = vadd.f32 1.0, %v144_v8  ;;  %v90_v11 = vmul.f32 -0.5, %v144_v8  ;;  %v93_v19 = vand.u32 2147483647, %v144_v8 }
  0x1b   :  { %v96_v13 = vadd.f32 1.0, %v146_v9  ;;  %v99_v14 = vmul.f32 -0.5, %v146_v9  ;;  %v102_v23 = vand.u32 2147483647, %v146_v9 }
  0x1c   :  { %147 = vlog2.f32 %v87_v10  ;;  %v91_v16 = vadd.f32 1.0, %v90_v11  ;;  %vm94_vm0 = vcmp.lt.f32.partialorder %v93_v19, 0.0004427343 }
  0x1d   :  { %149 = vlog2.f32 %v96_v13  ;;  %v100_v20 = vadd.f32 1.0, %v99_v14  ;;  %vm103_vm1 = vcmp.lt.f32.partialorder %v102_v23, 0.0004427343 }
  0x1e   :  { %v92_v24 = vmul.f32 %v144_v8, %v91_v16 }
  0x1f   :  { %v101_v27 = vmul.f32 %v146_v9, %v100_v20 }
  0x22   :  { %v148_v25 = vpop.eup %147 }
  0x23   :  { %v150_v28 = vpop.eup %149  ;;  %v89_v30 = vmul.f32 0.6931472, %v148_v25 }
  0x24   :  { %v98_v31 = vmul.f32 0.6931472, %v150_v28 }
  0x25   :  { %v95_v32 = vsel %vm94_vm0, %v92_v24, %v89_v30 }
  0x26   :  { %v104_v33 = vsel %vm103_vm1, %v101_v27, %v98_v31  ;;  %v105_v34 = vadd.f32 %v95_v32, %v77_v26 }
  0x27   :  { %v106_v35 = vadd.f32 %v104_v33, %v78_v29 }
  0x29   :  { %v108_v36 = vadd.f32 %v106_v35, %v105_v34 }
  0x2b   :  { %115 = vst [vmem:[#allocation8] sm:$0xff] %v108_v36 }
  0x2c   :  { %126 = dma.vmem_to_hbm [thread:$0]  %s122_s1, 128, %s124_s23, [#allocation5]  }
  0x2d   :  { %227 = dma.done.wait [#allocation5], 128  }
  0x2e   :  { %228 = vsyncadd [#allocation5], 4294967168 }
  0x2f   :  { %131 = vsyncpa [#allocation4], 1 }
  0x30   :  { %132 = vsyncpa [#allocation7], 1 }
  0x31   :  { %133 = vsyncpa [#allocation5], 1 }

</bundles_post_ra>
